<compile_context>
chip_gen: v7x
topology: tpu7x:2x2x1
jax: 0.10.0
libtpu: 0.0.40
codegen_flags: <defaults>
</compile_context>

<pallas_src>
import math
import functools

import jax
import jax.numpy as jnp
from jax.experimental import pallas as pl
from jax.experimental.pallas import tpu as pltpu


def _contrastive_kernel(*refs, decoupled, q_tile, mxu_dtype, separate_tq):
    if separate_tq:
        temps_ref, a_ref, t_ref, tq_ref, out_ref, den_j_ref = refs
    else:
        temps_ref, a_ref, t_ref, out_ref, den_j_ref = refs
        tq_ref = t_ref                       # bq == B: positives are the full key block

    qi = pl.program_id(1)
    nq = pl.num_programs(1)

    lb, bq, _ = a_ref.shape
    b = t_ref.shape[1]

    scale = jnp.exp(temps_ref[...].astype(jnp.float32))          # (Lb,1,1) = exp(temp_l)

    a = a_ref[...]                                               # (Lb,Bq,D) native dtype
    t = t_ref[...]                                               # (Lb,B ,D)

    # Similarities: bf16 (default) MXU matmul with f32 accumulation.
    sims = jnp.einsum('lid,ljd->lij',
                      a.astype(mxu_dtype), t.astype(mxu_dtype),
                      preferred_element_type=jnp.float32) * scale        # (Lb,Bq,B)

    # log(numerator) = diag(sims) for this query tile, as exact f32 row-dots.
    diag = jnp.sum(a.astype(jnp.float32) * tq_ref[...].astype(jnp.float32),
                   axis=-1, keepdims=True) * scale                       # (Lb,Bq,1)

    # No max shift: matches the reference's sims.exp() semantics exactly.
    e = jnp.exp(sims)                                                    # (Lb,Bq,B)

    if decoupled:
        # Decoupled contrastive learning: drop positives from the denominators by
        # zeroing the (global) diagonal — cheap VPU select, no -inf failure mode.
        row = jax.lax.broadcasted_iota(jnp.int32, (lb, bq, b), 1) + qi * q_tile
        col = jax.lax.broadcasted_iota(jnp.int32, (lb, bq, b), 2)
        e = jnp.where(row == col, 0.0, e)

    den_i = jnp.sum(e, axis=2, keepdims=True)                            # (Lb,Bq,1)

    @pl.when(qi == 0)
    def _():
        out_ref[...] = jnp.zeros_like(out_ref)
        den_j_ref[...] = jnp.zeros_like(den_j_ref)

    den_j_ref[...] += jnp.sum(e, axis=1, keepdims=True)                  # (Lb,1,B)

    # sum over this query tile of [-log(num) + 0.5*log(den_i)], pre-divided by B
    # (the mean over the batch dim); accumulates into the resident output block.
    part = jnp.sum(-diag + 0.5 * jnp.log(den_i)) / float(b)
    out_ref[...] += jnp.reshape(part, (1, 1, 1))

    @pl.when(qi == nq - 1)
    def _():
        out_ref[...] += jnp.reshape(
            0.5 * jnp.sum(jnp.log(den_j_ref[...])) / float(b), (1, 1, 1))


def _vmem_capacity_bytes():
    try:
        return int(pltpu.get_tpu_info().vmem_capacity_bytes)
    except Exception:
        return 64 * 1024 * 1024            # conservative fallback (fits every gen)


def _block_bytes(lb, bq, B, D, in_item, cast_to_bf16, separate_tq):
    """Per-grid-step VMEM footprint of one (lb, bq) tile (inputs double-buffered)."""
    dbl = 2
    streamed = dbl * ((lb * bq * D                       # audio query tile
                       + lb * B * D                      # full text key block
                       + (lb * bq * D if separate_tq else 0)) * in_item
                      + lb * 4)                          # temperatures
    casts = (lb * bq * D + lb * B * D) * 2 if cast_to_bf16 else 0
    f32_tmp = 4 * (2 * lb * bq * B                       # sims + e
                   + lb * bq * D                         # f32 prod for exact diag
                   + 2 * lb * bq + 2 * lb * B)           # diag / den_i / den_j / logs
    scratch = 4 * lb * B                                 # resident den_j accumulator
    return streamed + casts + f32_tmp + scratch + dbl * 4


def _pick_tiles(L, B, D, in_item, cast_to_bf16, budget):
    """Pick (layer_tile, query_tile).  Keep >=2 layer tiles when L permits
    (pipelining + v7x megacore) and keep the query tile sublane-aligned."""
    if B % 8 == 0:
        bq_opts = sorted([q for q in range(8, B + 1, 8) if B % q == 0], reverse=True)
    else:
        bq_opts = [B]
    bq_cands = [q for q in bq_opts if q <= 512] or [min(bq_opts)]

    lb_cap = max(1, L // 2)
    lb_opts = sorted([d for d in range(1, L + 1) if L % d == 0 and d <= lb_cap],
                     reverse=True) or [1]

    for bq in bq_cands:                                  # prefer large query tiles (MXU)
        separate_tq = (bq != B)
        for lb in lb_opts:                               # then the largest layer tile
            if _block_bytes(lb, bq, B, D, in_item, cast_to_bf16, separate_tq) <= budget:
                return lb, bq
    # TODO(synk): stream keys flash-style for B so large that even (1, 8, B) overflows VMEM.
    return 1, min(bq_opts)


def softmax_contrastive_loss(audio_latents, text_latents, temperatures,
                             decoupled_contrastive_learning=False,
                             mxu_dtype=jnp.bfloat16):
    """Equivalent of SoftmaxContrastiveLearning.forward (single device)."""
    # TODO(synk): distributed all-gather branch of the module is not implemented.
    if audio_latents.ndim == 2:
        audio_latents = audio_latents[None]
    if text_latents.ndim == 2:
        text_latents = text_latents[None]

    L, B, D = audio_latents.shape
    temps = jnp.reshape(temperatures, (L, 1, 1)).astype(jnp.float32)

    in_dtype = jnp.dtype(audio_latents.dtype)
    mm_dtype = jnp.dtype(mxu_dtype) if mxu_dtype is not None else in_dtype
    cast_to_bf16 = (mm_dtype != in_dtype)

    vmem_cap = _vmem_capacity_bytes()
    budget = int(vmem_cap * 0.45)                        # conservative tile budget
    vmem_limit = int(min(vmem_cap * 0.85, vmem_cap - (4 << 20)))

    lb, bq = _pick_tiles(L, B, D, in_dtype.itemsize, cast_to_bf16, budget)
    num_lt, num_q = L // lb, B // bq
    separate_tq = num_q > 1

    kernel = functools.partial(_contrastive_kernel,
                               decoupled=decoupled_contrastive_learning,
                               q_tile=bq, mxu_dtype=mm_dtype,
                               separate_tq=separate_tq)

    in_specs = [
        pl.BlockSpec((lb, 1, 1), lambda i, q: (i, 0, 0)),       # temperatures
        pl.BlockSpec((lb, bq, D), lambda i, q: (i, q, 0)),      # audio queries
        pl.BlockSpec((lb, B, D), lambda i, q: (i, 0, 0)),       # text keys (full batch)
    ]
    args = [temps, audio_latents, text_latents]
    if separate_tq:
        in_specs.append(pl.BlockSpec((lb, bq, D), lambda i, q: (i, q, 0)))  # text positives
        args.append(text_latents)

    out = pl.pallas_call(
        kernel,
        out_shape=jax.ShapeDtypeStruct((num_lt, 1, 1), jnp.float32),
        grid=(num_lt, num_q),
        in_specs=in_specs,
        # Per-layer-tile partial loss; block is resident across the q axis.
        out_specs=pl.BlockSpec((1, 1, 1), lambda i, q: (i, 0, 0)),
        scratch_shapes=[pltpu.VMEM((lb, 1, B), jnp.float32)],   # den_j accumulator
        compiler_params=pltpu.CompilerParams(
            dimension_semantics=("parallel", "arbitrary"),      # layer tiles // cores
            vmem_limit_bytes=vmem_limit),
    )(*args)

    return jnp.sum(out)


if __name__ == "__main__":
    key = jax.random.PRNGKey(0)
    L, B, D = 2, 8, 32          # layers, batch, latent dim (small demo shapes)

    k1, k2 = jax.random.split(key)
    audio = jax.random.normal(k1, (L, B, D), dtype=jnp.float32)
    text = jax.random.normal(k2, (L, B, D), dtype=jnp.float32)
    # L2-normalize latents (standard for contrastive learning)
    audio = audio / jnp.linalg.norm(audio, axis=-1, keepdims=True)
    text = text / jnp.linalg.norm(text, axis=-1, keepdims=True)

    # nn.Parameter(torch.ones(layers, 1, 1) * math.log(init_temp)), init_temp=10
    temperatures = jnp.full((L, 1, 1), math.log(10.0), dtype=jnp.float32)

    def ref_loss(a, t, temps, decoupled=False):
        sims = jnp.einsum('lid,ljd->lij', a, t) * jnp.exp(temps)
        e = jnp.exp(sims)
        num = jnp.diagonal(e, axis1=1, axis2=2)
        if decoupled:
            eye = jnp.eye(a.shape[1], dtype=bool)
            e = jnp.where(eye[None], 0.0, e)
        den_i = e.sum(-1)
        den_j = e.sum(-2)
        cl = -jnp.log(num) + 0.5 * (jnp.log(den_i) + jnp.log(den_j))
        return jnp.sum(jnp.mean(cl, axis=-1))

    for decoupled in (False, True):
        ref = ref_loss(audio, text, temperatures, decoupled)

        # Exact f32-similarity path: tight check against the reference.
        loss32 = jax.block_until_ready(softmax_contrastive_loss(
            audio, text, temperatures,
            decoupled_contrastive_learning=decoupled, mxu_dtype=jnp.float32))
        assert jnp.allclose(loss32, ref, rtol=1e-4, atol=1e-3), (decoupled, loss32, ref)

        # Default fast path (bf16 MXU operands, f32 accumulation): looser check.
        lossbf = jax.block_until_ready(softmax_contrastive_loss(
            audio, text, temperatures,
            decoupled_contrastive_learning=decoupled))
        assert jnp.allclose(lossbf, ref, rtol=5e-2, atol=5e-2), (decoupled, lossbf, ref)

    print("KERNEL_OK")
</pallas_src>

<mosaic_0001>
module attributes {stable_mosaic.version = 11 : i64} {
  func.func @_contrastive_kernel(%arg0: i32, %arg1: i32, %arg2: memref<1x1x1xf32, #tpu.memory_space<vmem>>, %arg3: memref<1x8x32xf32, #tpu.memory_space<vmem>>, %arg4: memref<1x8x32xf32, #tpu.memory_space<vmem>>, %arg5: memref<1x1x1xf32, #tpu.memory_space<vmem>>, %arg6: memref<1x1x8xf32, #tpu.memory_space<vmem>>) attributes {dimension_semantics = [#tpu.dimension_semantics<parallel>, #tpu.dimension_semantics<arbitrary>], iteration_bounds = array<i64: 2, 1>, scalar_prefetch = 0 : i64, scratch_operands = 1 : i64, tpu.core_type = #tpu.core_type<tc>, window_params = [{transform_indices = @transform_0, window_bounds = array<i64: 1, 1, 1>}, {transform_indices = @transform_1, window_bounds = array<i64: 1, 8, 32>}, {transform_indices = @transform_2, window_bounds = array<i64: 1, 8, 32>}, {transform_indices = @transform_3, window_bounds = array<i64: 1, 1, 1>}]} {
    %c0 = arith.constant 0 : index
    %c0_0 = arith.constant 0 : index
    %c0_1 = arith.constant 0 : index
    %0 = vector.load %arg2[%c0, %c0_0, %c0_1] : memref<1x1x1xf32, #tpu.memory_space<vmem>>, vector<1x1x1xf32>
    %1 = math.exp %0 : vector<1x1x1xf32>
    %c0_2 = arith.constant 0 : index
    %c0_3 = arith.constant 0 : index
    %c0_4 = arith.constant 0 : index
    %2 = vector.load %arg3[%c0_2, %c0_3, %c0_4] : memref<1x8x32xf32, #tpu.memory_space<vmem>>, vector<1x8x32xf32>
    %c0_5 = arith.constant 0 : index
    %c0_6 = arith.constant 0 : index
    %c0_7 = arith.constant 0 : index
    %3 = vector.load %arg4[%c0_5, %c0_6, %c0_7] : memref<1x8x32xf32, #tpu.memory_space<vmem>>, vector<1x8x32xf32>
    "tpu.trace_start"() <{level = 10 : i32, message = "lid,ljd->lij"}> : () -> ()
    %cst = arith.constant dense<0.000000e+00> : vector<1x8x8xf32>
    %4 = tpu.matmul %2, %3, %cst {dimension_numbers = #tpu.dot_dimension_numbers<[2], [2], [1], [1], [0, 0, 0, 1, 1, 1], [0], [0]>} : vector<1x8x32xf32>, vector<1x8x32xf32>, vector<1x8x8xf32> -> vector<1x8x8xf32>
    "tpu.trace_stop"() : () -> ()
    %5 = vector.broadcast %1 : vector<1x1x1xf32> to vector<1x8x8xf32>
    %6 = arith.mulf %4, %5 : vector<1x8x8xf32>
    %c0_8 = arith.constant 0 : index
    %c0_9 = arith.constant 0 : index
    %c0_10 = arith.constant 0 : index
    %7 = vector.load %arg4[%c0_8, %c0_9, %c0_10] : memref<1x8x32xf32, #tpu.memory_space<vmem>>, vector<1x8x32xf32>
    %8 = arith.mulf %2, %7 : vector<1x8x32xf32>
    %cst_11 = arith.constant dense<0.000000e+00> : vector<1x8xf32>
    %9 = vector.multi_reduction <add>, %8, %cst_11 [2] : vector<1x8x32xf32> to vector<1x8xf32>
    %10 = vector.shape_cast %9 : vector<1x8xf32> to vector<1x8x1xf32>
    %11 = vector.broadcast %1 : vector<1x1x1xf32> to vector<1x8x1xf32>
    %12 = arith.mulf %10, %11 : vector<1x8x1xf32>
    %13 = math.exp %6 : vector<1x8x8xf32>
    %cst_12 = arith.constant dense<0.000000e+00> : vector<1x8xf32>
    %14 = vector.multi_reduction <add>, %13, %cst_12 [2] : vector<1x8x8xf32> to vector<1x8xf32>
    %15 = vector.shape_cast %14 : vector<1x8xf32> to vector<1x8x1xf32>
    %c0_i32 = arith.constant 0 : i32
    %16 = arith.cmpi eq, %arg1, %c0_i32 : i32
    %17 = arith.extui %16 : i1 to i32
    %c0_i32_13 = arith.constant 0 : i32
    %18 = arith.cmpi ne, %17, %c0_i32_13 : i32
    scf.if %18 {
      %cst_33 = arith.constant 0.000000e+00 : f32
      %42 = vector.broadcast %cst_33 : f32 to vector<1x1x1xf32>
      %c0_34 = arith.constant 0 : index
      %c0_35 = arith.constant 0 : index
      %c0_36 = arith.constant 0 : index
      %43 = vector.load %arg5[%c0_34, %c0_35, %c0_36] : memref<1x1x1xf32, #tpu.memory_space<vmem>>, vector<1x1x1xf32>
      tpu.vector_store %arg5[%c0_34, %c0_35, %c0_36], %42 {strides = array<i32>} : memref<1x1x1xf32, #tpu.memory_space<vmem>>, vector<1x1x1xf32>,
      %cst_37 = arith.constant 0.000000e+00 : f32
      %44 = vector.broadcast %cst_37 : f32 to vector<1x1x8xf32>
      %c0_38 = arith.constant 0 : index
      %c0_39 = arith.constant 0 : index
      %c0_40 = arith.constant 0 : index
      %45 = vector.load %arg6[%c0_38, %c0_39, %c0_40] : memref<1x1x8xf32, #tpu.memory_space<vmem>>, vector<1x1x8xf32>
      tpu.vector_store %arg6[%c0_38, %c0_39, %c0_40], %44 {strides = array<i32>} : memref<1x1x8xf32, #tpu.memory_space<vmem>>, vector<1x1x8xf32>,
    } else {
    }
    %c0_14 = arith.constant 0 : index
    %c0_15 = arith.constant 0 : index
    %c0_16 = arith.constant 0 : index
    %19 = vector.load %arg6[%c0_14, %c0_15, %c0_16] : memref<1x1x8xf32, #tpu.memory_space<vmem>>, vector<1x1x8xf32>
    %cst_17 = arith.constant dense<0.000000e+00> : vector<1x8xf32>
    %20 = vector.multi_reduction <add>, %13, %cst_17 [1] : vector<1x8x8xf32> to vector<1x8xf32>
    %21 = vector.shape_cast %20 : vector<1x8xf32> to vector<1x1x8xf32>
    %22 = arith.addf %19, %21 : vector<1x1x8xf32>
    %c0_18 = arith.constant 0 : index
    %c0_19 = arith.constant 0 : index
    %c0_20 = arith.constant 0 : index
    %23 = vector.load %arg6[%c0_18, %c0_19, %c0_20] : memref<1x1x8xf32, #tpu.memory_space<vmem>>, vector<1x1x8xf32>
    tpu.vector_store %arg6[%c0_18, %c0_19, %c0_20], %22 {strides = array<i32>} : memref<1x1x8xf32, #tpu.memory_space<vmem>>, vector<1x1x8xf32>,
    %cst_21 = arith.constant 0.000000e+00 : f32
    %24 = vector.broadcast %cst_21 : f32 to vector<1x8x1xf32>
    %25 = arith.subf %24, %12 : vector<1x8x1xf32>
    %26 = math.log %15 : vector<1x8x1xf32>
    %cst_22 = arith.constant 5.000000e-01 : f32
    %27 = vector.broadcast %cst_22 : f32 to vector<1x8x1xf32>
    %28 = arith.mulf %27, %26 : vector<1x8x1xf32>
    %29 = arith.addf %25, %28 : vector<1x8x1xf32>
    %30 = vector.shape_cast %29 : vector<1x8x1xf32> to vector<1x1x8x1xf32>
    %cst_23 = arith.constant dense<0.000000e+00> : vector<1xf32>
    %31 = vector.multi_reduction <add>, %30, %cst_23 [1, 2, 3] : vector<1x1x8x1xf32> to vector<1xf32>
    %32 = vector.shape_cast %31 : vector<1xf32> to vector<1x1x1x1xf32>
    %33 = vector.extract %32[0, 0, 0, 0] : f32 from vector<1x1x1x1xf32>
    %cst_24 = arith.constant 8.000000e+00 : f32
    %34 = arith.divf %33, %cst_24 : f32
    %c0_25 = arith.constant 0 : index
    %c0_26 = arith.constant 0 : index
    %c0_27 = arith.constant 0 : index
    %35 = vector.load %arg5[%c0_25, %c0_26, %c0_27] : memref<1x1x1xf32, #tpu.memory_space<vmem>>, vector<1x1x1xf32>
    %36 = vector.broadcast %34 : f32 to vector<1x1x1xf32>
    %37 = arith.addf %35, %36 : vector<1x1x1xf32>
    %c0_28 = arith.constant 0 : index
    %c0_29 = arith.constant 0 : index
    %c0_30 = arith.constant 0 : index
    %38 = vector.load %arg5[%c0_28, %c0_29, %c0_30] : memref<1x1x1xf32, #tpu.memory_space<vmem>>, vector<1x1x1xf32>
    tpu.vector_store %arg5[%c0_28, %c0_29, %c0_30], %37 {strides = array<i32>} : memref<1x1x1xf32, #tpu.memory_space<vmem>>, vector<1x1x1xf32>,
    %c0_i32_31 = arith.constant 0 : i32
    %39 = arith.cmpi eq, %arg1, %c0_i32_31 : i32
    %40 = arith.extui %39 : i1 to i32
    %c0_i32_32 = arith.constant 0 : i32
    %41 = arith.cmpi ne, %40, %c0_i32_32 : i32
    scf.if %41 {
      %c0_33 = arith.constant 0 : index
      %c0_34 = arith.constant 0 : index
      %c0_35 = arith.constant 0 : index
      %42 = vector.load %arg5[%c0_33, %c0_34, %c0_35] : memref<1x1x1xf32, #tpu.memory_space<vmem>>, vector<1x1x1xf32>
      %c0_36 = arith.constant 0 : index
      %c0_37 = arith.constant 0 : index
      %c0_38 = arith.constant 0 : index
      %43 = vector.load %arg6[%c0_36, %c0_37, %c0_38] : memref<1x1x8xf32, #tpu.memory_space<vmem>>, vector<1x1x8xf32>
      %44 = math.log %43 : vector<1x1x8xf32>
      %45 = vector.shape_cast %44 : vector<1x1x8xf32> to vector<1x1x1x8xf32>
      %cst_39 = arith.constant dense<0.000000e+00> : vector<1xf32>
      %46 = vector.multi_reduction <add>, %45, %cst_39 [1, 2, 3] : vector<1x1x1x8xf32> to vector<1xf32>
      %47 = vector.shape_cast %46 : vector<1xf32> to vector<1x1x1x1xf32>
      %48 = vector.extract %47[0, 0, 0, 0] : f32 from vector<1x1x1x1xf32>
      %cst_40 = arith.constant 5.000000e-01 : f32
      %49 = arith.mulf %cst_40, %48 : f32
      %cst_41 = arith.constant 8.000000e+00 : f32
      %50 = arith.divf %49, %cst_41 : f32
      %51 = vector.broadcast %50 : f32 to vector<1x1x1xf32>
      %52 = arith.addf %42, %51 : vector<1x1x1xf32>
      %c0_42 = arith.constant 0 : index
      %c0_43 = arith.constant 0 : index
      %c0_44 = arith.constant 0 : index
      %53 = vector.load %arg5[%c0_42, %c0_43, %c0_44] : memref<1x1x1xf32, #tpu.memory_space<vmem>>, vector<1x1x1xf32>
      tpu.vector_store %arg5[%c0_42, %c0_43, %c0_44], %52 {strides = array<i32>} : memref<1x1x1xf32, #tpu.memory_space<vmem>>, vector<1x1x1xf32>,
    } else {
    }
    return
  }
  func.func @transform_0(%arg0: i32, %arg1: i32) -> (i32, i32, i32) {
    %c0_i32 = arith.constant 0 : i32
    %c0_i32_0 = arith.constant 0 : i32
    %c0_i32_1 = arith.constant 0 : i32
    return %arg0, %c0_i32, %c0_i32_0 : i32, i32, i32
  }
  func.func @transform_1(%arg0: i32, %arg1: i32) -> (i32, i32, i32) {
    %c0_i32 = arith.constant 0 : i32
    %c0_i32_0 = arith.constant 0 : i32
    return %arg0, %arg1, %c0_i32 : i32, i32, i32
  }
  func.func @transform_2(%arg0: i32, %arg1: i32) -> (i32, i32, i32) {
    %c0_i32 = arith.constant 0 : i32
    %c0_i32_0 = arith.constant 0 : i32
    %c0_i32_1 = arith.constant 0 : i32
    return %arg0, %c0_i32, %c0_i32_0 : i32, i32, i32
  }
  func.func @transform_3(%arg0: i32, %arg1: i32) -> (i32, i32, i32) {
    %c0_i32 = arith.constant 0 : i32
    %c0_i32_0 = arith.constant 0 : i32
    %c0_i32_1 = arith.constant 0 : i32
    return %arg0, %c0_i32, %c0_i32_0 : i32, i32, i32
  }
}

</mosaic_0001>

<bundles_post_ra>
// kernel: tpu_custom_call.1
= control target key start
LH: loop header
LB: loop body
LE: loop exit
PB: predicated region body
PF: predicated region fallthrough
CT: control target
= control target key end

     0   :  { %8 = vsyncpa [#allocation4], 0  ;;  %s951_s0 = inlined_call_operand.vmem [shape: f32[2,1,1], index: 0, kind: input, shape index: {}]   ;;  %s952_s1 = inlined_call_operand.hbm [shape: f32[2,8,32], index: 1, kind: input, shape index: {}]   ;;  %s953_s2 = inlined_call_operand.hbm [shape: f32[2,8,32], index: 2, kind: input, shape index: {}]   ;;  %s954_s3 = inlined_call_operand.vmem [shape: f32[2,1,1], index: 3, kind: output, shape index: {}]  }
   0x1   :  { %10 = vsyncpa [#allocation4 + $0x1], 0 }
   0x2   :  { %11 = vsyncpa [#allocation6], 0 }
   0x3   :  { %13 = vsyncpa [#allocation6 + $0x1], 0  ;;  %s760_s12 = smov 0   ;;  %s762_s13 = smov 0  }
   0x4   :  { %s764_s14 = smov 0   ;;  %s766_s15 = smov 0  }
   0x5   :  { %s768_s16 = smov 0   ;;  %s770_s17 = smov 0  }
   0x6 LB: > { %s521_s18 = sadd.s32 4294967295, %s733_s17   ;;  %s31_s19 = sadd.s32 1, %s729_s16  ;;  %s733_s17 = sphi %s770_s17, %s19_s17   ;;  %s729_s16 = sphi %s768_s16, %s968_s16   ;;  %s725_s15 = sphi %s766_s15, %s967_s15   ;;  %s721_s14 = sphi %s764_s14, %s966_s14   ;;  %s717_s13 = sphi %s762_s13, %s965_s13   ;;  %s713_s12 = sphi %s760_s12, %s964_s12  }
   0x7   : > { %p33_p0 = scmp.ge.s32.totalorder %s31_s19, 2  ;;  %s66_s20 = sadd.s32 1, %s721_s14 }
   0x8   : > { %p73_p1 = scmp.ne.s32.totalorder %s721_s14, %s717_s13  ;;  %p74_p2 = scmp.eq.s32.totalorder %s733_s17, 0 }
   0x9   : > { %s970_s19 = smov (%p33_p0, %s31_s19), 0  ;;  %p79_p4 = scmp.ne.s32.totalorder %s717_s13, %s713_s12 }
   0xa   : > { %p796_p3 = por %p74_p2, %p73_p1  ;;  %s61_s22 = ssub.s32 %s729_s16, %s970_s19 }
   0xb   : > { %p80_p5 = scmp.eq.s32.totalorder %s521_s18, 0  ;;  %p64_p6 = scmp.eq.s32.totalorder %s61_s22, 0 }
   0xc   : > { %p558_p8 = scmp.lt.s32.totalorder %s733_s17, 2  ;;  %s812_s25 = sand.u32 1, %s721_s14  }
   0xd   : > { %p803_p7 = por %p80_p5, %p79_p4  ;;  %s526_s26 = sshll.u32 %s729_s16, 7 }
   0xe   : > { %s809_s24 = scalar_select %p64_p6, %s721_s14, %s66_s20  }
   0xf   : > { %s957_s23 = scalar_select %p803_p7, 1, 0 }
  0x10   : > { %s525_s27 = sshll.u32 %s812_s25, 3  ;;  %s821_s30 = scalar_lea.hbm %s952_s1, %s526_s26 }
  0x11   : > { %s165_s4 = scalar_lea.vmem [#allocation3], %s525_s27  ;;  %p827_p9 = pnand %p558_p8, %p796_p3 }
  0x12   : > { %s173_s5 = sshll.u32 %s165_s4, 4  ;;  %s162_s7 = scalar_lea.sflag [#allocation4], %s812_s25  ;;  %s831_s5 = int_to_ptr.vmem [resolvable:$true] %s173_s5 }
  0x13   : > { %s619_s8 = scalar_lea.hbm %s821_s30, 128  ;;  %p621_p13 = pneg %p827_p9 }
  0x14   : > { %p620_p12 = scmp.ne.s32.totalorder %s821_s30, %s619_s8  ;;  %s624_s11 = scalar_lea.hbm %s952_s1, 256 }
  0x15   : > { %p625_p2 = scmp.lt.u32.totalorder %s821_s30, %s952_s1  ;;  %p626_p3 = scmp.lt.u32.totalorder %s624_s11, %s619_s8 }
  0x16   : > { %p622_p0 = pnand %p621_p13, %p620_p12  ;;  %p628_p5 = scmp.lt.u32.totalorder %s619_s8, %s821_s30 }
  0x17   : > { %p627_p4 = por %p626_p3, %p625_p2 }
  0x18   : > { %p623_p1 = pneg %p622_p0 }
  0x19   : > { %p629_p6 = por %p628_p5, %p627_p4 }
  0x1b   : > { %p630_p8 = pnand %p629_p6, %p623_p1 }
  0x1d   : > { %633 = shalt.err (!%p630_p8)
}
  0x1e   : > { %s634_s20 = scalar_lea.vmem %s831_s5, 128  ;;  %s735_s21 = smov [#allocation3]  }
  0x1f   : > { %p635_p12 = scmp.ne.s32.totalorder %s831_s5, %s634_s20  ;;  %s639_s22 = sshll.u32 %s735_s21, 4  ;;  %s640_s22 = int_to_ptr.vmem [resolvable:$false] %s639_s22 }
  0x20   : > { %s641_s28 = scalar_lea.vmem %s640_s22, 256  ;;  %p642_p11 = scmp.lt.s32.totalorder %s831_s5, %s640_s22 }
  0x21   : > { %p637_p0 = pnand %p635_p12, %p621_p13  ;;  %p643_p2 = scmp.lt.s32.totalorder %s641_s28, %s634_s20 }
  0x23   : > { %p638_p10 = pneg %p637_p0  ;;  %p644_p3 = por %p643_p2, %p642_p11 }
  0x25   : > { %p645_p4 = pnand %p644_p3, %p638_p10 }
  0x27   : > { %648 = shalt.err (!%p645_p4)
}
  0x28   : > { %554 = dma.hbm_to_vmem [thread:$0]  (!%p827_p9), %s821_s30, 128, %s831_s5, %s162_s7  }
  0x29   : > { %p959_p1 = scmp.lt.s32.totalorder %s733_s17, 3  ;;  %p960_p5 = scmp.ge.s32.totalorder %s733_s17, 1 }
  0x2a   : > { %s874_s9 = scalar_lea.hbm %s953_s2, %s526_s26  ;;  %s184_s10 = scalar_lea.vmem [#allocation5], %s525_s27 }
  0x2b   : > { %p865_p6 = pnand %p960_p5, %p959_p1  ;;  %s191_s11 = sshll.u32 %s184_s10, 4  ;;  %s192_s11 = int_to_ptr.vmem [resolvable:$true] %s191_s11 }
  0x2c   : > { %s181_s30 = scalar_lea.sflag [#allocation6], %s812_s25  ;;  %s649_s5 = scalar_lea.hbm %s874_s9, 128 }
  0x2d   : > { %s961_s29 = scalar_select %p865_p6, 1, 0 }
  0x2e   : > { %p650_p10 = scmp.ne.s32.totalorder %s874_s9, %s649_s5  ;;  %s654_s26 = scalar_lea.hbm %s953_s2, 256 }
  0x2f   : > { %p655_p12 = scmp.lt.u32.totalorder %s874_s9, %s953_s2  ;;  %p656_p0 = scmp.lt.u32.totalorder %s654_s26, %s649_s5 }
  0x30   : > { %p652_p11 = pnand %p650_p10, %p621_p13  ;;  %p658_p3 = scmp.lt.u32.totalorder %s649_s5, %s874_s9 }
  0x31   : > { %p657_p2 = por %p656_p0, %p655_p12 }
  0x32   : > { %p653_p8 = pneg %p652_p11 }
  0x33   : > { %p659_p4 = por %p658_p3, %p657_p2 }
  0x35   : > { %p660_p1 = pnand %p659_p4, %p653_p8 }
  0x37   : > { %663 = shalt.err (!%p660_p1)
}
  0x38   : > { %s664_s25 = scalar_lea.vmem %s192_s11, 128  ;;  %s736_s27 = smov [#allocation5]  }
  0x39   : > { %p665_p5 = scmp.ne.s32.totalorder %s192_s11, %s664_s25  ;;  %s669_s21 = sshll.u32 %s736_s27, 4  ;;  %s670_s21 = int_to_ptr.vmem [resolvable:$false] %s669_s21 }
  0x3a   : > { %s671_s22 = scalar_lea.vmem %s670_s21, 256  ;;  %p672_p7 = scmp.lt.s32.totalorder %s192_s11, %s670_s21 }
  0x3b   : > { %p667_p10 = pnand %p665_p5, %p621_p13  ;;  %p673_p6 = scmp.lt.s32.totalorder %s671_s22, %s664_s25 }
  0x3d   : > { %p668_p11 = pneg %p667_p10  ;;  %p674_p0 = por %p673_p6, %p672_p7 }
  0x3f   : > { %p675_p12 = pnand %p674_p0, %p668_p11 }
  0x41   : > { %678 = shalt.err (!%p675_p12)
}
  0x42   : > { %557 = dma.hbm_to_vmem [thread:$0]  (!%p827_p9), %s874_s9, 128, %s192_s11, %s181_s30  }
  0x43   : > { %p962_p8 = scmp.ne.s32.totalorder %s961_s29, 0 }
  0x44   : > { %s202_s28 = sand.u32 (!%p962_p8), 1, %s717_s13   ;;  %p963_p13 = scmp.ne.s32.totalorder (!%p962_p8), %s957_s23, 0 }
  0x45   : > { %200 = sbr.rel (%p962_p8) target bundleno = 692 (0x2b4), region = 32  ;;  %s530_s4 = sshll.u32 (!%p962_p8), %s202_s28, 3 }
  0x46   : > { %s203_s8 = scalar_lea.sflag (!%p962_p8), [#allocation4], %s202_s28  ;;  %s206_s10 = scalar_lea.vmem (!%p962_p8), [#allocation3], %s530_s4 }
  0x4c   : > { %704 = dma.done.wait (%p963_p13), %s203_s8, 128  }
  0x4d   : > { %706 = vsyncadd (%p963_p13), %s203_s8, 4294967168  ;;  %s212_s5 = scalar_lea.sflag [#allocation6], %s202_s28  ;;  %s215_s7 = scalar_lea.vmem [#allocation5], %s530_s4 }
  0x4e   : > { %708 = dma.done.wait (%p963_p13), %s212_s5, 128  }
  0x4f   : > { %710 = vsyncadd (%p963_p13), %s212_s5, 4294967168  ;;  %p244_p7 = scmp.lt.s32.totalorder %s725_s15, 1  ;;  %v737_v0 = vmov 0.0   ;;  %vm738_vm0 = vmmov 0   ;;  %vm359_vm1 = vcmask 0   ;;  %v739_v1 = vmov 0  }
  0x50   : > { %538 = vmatprep.subr.mxu0 %v737_v0  ;;  %540 = vmatprep.mubr.msk.f32.mxu0 %vm738_vm0, %v737_v0  ;;  %vm255_vm2 = vcmask 261120   ;;  %v254_v2 = vld [vmem:[%s215_s7] sm:$0xff]  ;;  %v253_v4 = vld [vmem:[%s206_s10] sm:$0xff]  ;;  %v333_v6 = vlaneseq  ;;  %vm361_vm3 = vcmask 57344   ;;  %vm351_vm4 = vcmask 64512  }
  0x51   : > { %s972_s15 = smov (!%p244_p7, %s725_s15), 1  ;;  %610 = vset.pattern.permute.xlu0 %v739_v1  ;;  %539 = vmatpush3.xpose.msk.msra.mxu0 %vm255_vm2, %v254_v2  ;;  %362 = vst.msk [vmem:[#allocation2] sm:$0x1] %vm361_vm3, %v737_v0  ;;  %v343_v11 = vmul.f32 %v254_v2, %v253_v4  ;;  %vm378_vm5 = vcmask 7168  }
  0x52   : > { %s914_s9 = scalar_lea.vmem %s954_s3, %s972_s15  ;;  %s246_s23 = scalar_lea.vmem %s951_s0, %s972_s15  ;;  %v334_v7 = vshrl.u32 %v333_v6, 7 }
  0x53   : > { %360 = vst.msk [vmem:[%s914_s9] sm:$0x1] %vm359_vm1, %v737_v0  ;;  %v250_v3 = vld [vmem:[%s246_s23] sm:$0x1]  ;;  %v344_v12 = vsel %vm255_vm2, %v343_v11, 0.0 }
  0x54   : > { %v251_v5 = vmul.f32 1.442695, %v250_v3  ;;  %541 = vmatmul.mubr.msk.f32.vlgmr.msra.gmra.mrb[0].mxu0 %vm255_vm2, %v253_v4  ;;  %v335_v8 = vsub.s32 0, %v334_v7  ;;  %345 = vadd.xlane.f32.xlu1 %v344_v12 }
  0x56   : > { %611 = vpow2.f32 %v251_v5 }
  0x58   : > { %v363_v25 = vld [vmem:[#allocation2] sm:$0x1] }
  0x5a   : > { %v392_v55 = vld [vmem:[%s914_s9] sm:$0x1] }
  0x60   : > { %v612_v9 = vpop.eup %611 }
  0x61   : > { %v336_v10 = vrot.slane %v612_v9, %v335_v8 }
  0x63   : > { %338 = vperm.xlu0 %610, %v336_v10  }
  0xe1   : > { %v346_v30 = vpop.xlane.xlu1 %345 }
  0xe2   : > { %v339_v13 = vpop.permute.xlu0 %338  ;;  %v348_v31 = vmul.f32 %v346_v30, %v336_v10 }
  0xe4   : > { %v373_v34 = vsub.f32 0.0, %v348_v31 }
 0x127   : > { %v328_v14 = vpop.f32.mrb[0].mxu0 }
 0x128   : > { %v341_v15 = vmul.f32 %v339_v13, %v328_v14  ;;  %v542_v16 = vpop.f32.mrb[1].mxu0 }
 0x12a   : > { %v349_v17 = vmul.f32 1.442695, %v341_v15 }
 0x12c   : > { %613 = vpow2.f32 %v349_v17 }
 0x136   : > { %v614_v18 = vpop.eup %613 }
 0x137   : > { %v352_v19 = vsel %vm351_vm4, %v614_v18, 0.0 }
 0x138   : > { %353 = vadd.xlane.f32.xlu0 %v352_v19  ;;  %v364_v20 = vrot.slane %v352_v19, 4 }
 0x13a   : > { %v365_v21 = vadd.f32 %v364_v20, %v352_v19 }
 0x13c   : > { %v366_v22 = vrot.slane %v365_v21, 2 }
 0x13e   : > { %v367_v23 = vadd.f32 %v366_v22, %v365_v21 }
 0x140   : > { %v368_v24 = vrot.slane %v367_v23, 1 }
 0x142   : > { %v369_v26 = vadd.f32 %v368_v24, %v367_v23 }
 0x144   : > { %v370_v27 = vadd.f32 %v369_v26, %v363_v25 }
 0x146   : > { %372 = vst.msk [vmem:[#allocation2] sm:$0x1] %vm361_vm3, %v370_v27 }
 0x14d   : > { %v401_v29 = vld [vmem:[#allocation2] sm:$0x1] }
 0x1c5   : > { %v354_v28 = vpop.xlane.xlu0 %353 }
 0x1c6   : > { %615 = vlog2.f32 %v354_v28 }
 0x1c7   : > { %617 = vlog2.f32 %v401_v29 }
 0x1d0   : > { %v616_v32 = vpop.eup %615 }
 0x1d1   : > { %v375_v33 = vmul.f32 0.6931472, %v616_v32  ;;  %v618_v36 = vpop.eup %617 }
 0x1d2   : > { %v403_v39 = vmul.f32 0.6931472, %v618_v36 }
 0x1d3   : > { %v376_v35 = vmul.f32 0.5, %v375_v33 }
 0x1d4   : > { %v404_v40 = vsel %vm361_vm3, %v403_v39, 0.0 }
 0x1d5   : > { %v377_v37 = vadd.f32 %v376_v35, %v373_v34 }
 0x1d7   : > { %v379_v38 = vsel %vm378_vm5, %v377_v37, 0.0 }
 0x1d8   : > { %380 = vadd.xlane.f32.xlu1 %v379_v38 }
 0x1dc   : > { %405 = vadd.xlane.f32.xlu1 %v404_v40 }
 0x265   : > { %v381_v41 = vpop.xlane.xlu1 %380 }
 0x266   : > { %v382_v42 = vrot.slane %v381_v41, 4 }
 0x268   : > { %v383_v43 = vadd.f32 %v382_v42, %v381_v41 }
 0x269   : > { %v406_v44 = vpop.xlane.xlu1 %405 }
 0x26a   : > { %v384_v45 = vrot.slane %v383_v43, 2  ;;  %v407_v46 = vrot.slane %v406_v44, 4 }
 0x26c   : > { %v408_v47 = vadd.f32 %v407_v46, %v406_v44  ;;  %v385_v48 = vadd.f32 %v384_v45, %v383_v43 }
 0x26e   : > { %v409_v49 = vrot.slane %v408_v47, 2  ;;  %v386_v50 = vrot.slane %v385_v48, 1 }
 0x270   : > { %v410_v51 = vadd.f32 %v409_v49, %v408_v47  ;;  %v387_v52 = vadd.f32 %v386_v50, %v385_v48 }
 0x272   : > { %543 = vpush %v387_v52  ;;  %v411_v53 = vrot.slane %v410_v51, 1 }
 0x274   : > { %v412_v54 = vadd.f32 %v411_v53, %v410_v51 }
 0x276   : > { %545 = vpush %v412_v54 }
 0x2a3   : > { %s544_s15 = spop %543 }
 0x2a4   : > { %s391_s12 = smul.f32 0.125, %s544_s15 }
 0x2a6   : > { %v393_v56 = vstv %s391_s12 }
 0x2a7   : > { %v394_v57 = vadd.f32 %v393_v56, %v392_v55  ;;  %s546_s26 = spop %545 }
 0x2a8   : > { %s414_s18 = smul.f32 0.5, %s546_s26 }
 0x2a9   : > { %396 = vst.msk [vmem:[%s914_s9] sm:$0x1] %vm359_vm1, %v394_v57 }
 0x2aa   : > { %s417_s20 = smul.f32 0.125, %s414_s18 }
 0x2ac   : > { %v418_v59 = vstv %s417_s20 }
 0x2b0   : > { %v400_v58 = vld [vmem:[%s914_s9] sm:$0x1] }
 0x2b1   : > { %v419_v60 = vadd.f32 %v418_v59, %v400_v58 }
 0x2b3   : > { %420 = vst.msk [vmem:[%s914_s9] sm:$0x1] %vm359_vm1, %v419_v60 }
 0x2b4 PF: > { %s19_s17 = sadd.s32 1, %s733_s17   ;;  %s964_s12 = smov %s717_s13 }
 0x2b5   : > { %p16_p9 = scmp.ge.s32.totalorder %s19_s17, 4   ;;  %s965_s13 = smov %s721_s14 }
 0x2b6   : > { %s966_s14 = smov %s809_s24  ;;  %s967_s15 = smov %s729_s16 }
 0x2b7   : > { %s968_s16 = smov %s970_s19  ;;  %18 = sbr.rel (!%p16_p9) target bundleno = 6 (0x6), region = 96 }
 0x2be   :  { %438 = vsyncpa [#allocation4], 1 }
 0x2bf   :  { %440 = vsyncpa [#allocation4 + $0x1], 1 }
 0x2c0   :  { %441 = vsyncpa [#allocation6], 1 }
 0x2c1   :  { %443 = vsyncpa [#allocation6 + $0x1], 1 }

</bundles_post_ra>
